<compile_context>
chip_gen: v7x
topology: tpu7x:2x2x1
jax: 0.10.0
libtpu: 0.0.40
codegen_flags: <defaults>
</compile_context>

<pallas_src>
import functools
import math

import jax
import jax.numpy as jnp
from jax.experimental import pallas as pl
from jax.experimental.pallas import tpu as pltpu

_EPS = 1e-6
_LANES = 128


def _sublane_req(dtype):
    """Minimum second-to-last tile dim for a dtype: 8 (4B), 16 (2B), 32 (1B)."""
    return max(8, 32 // jnp.dtype(dtype).itemsize)


def _roundup(a, b):
    return ((a + b - 1) // b) * b


def _dice_partial_kernel(x_ref, t_ref, inter_ref, psum_ref, tsum_ref, *,
                         normalization, spatial_size, s_sub, needs_mask):
    # x_ref / t_ref : (1, C, TM, 128) lane-dense block or (1, C, TILE) generic block,
    #                 natural NCHW order (no host-side transpose).
    # inter/psum/tsum : (1, 1, C, ACC_LANES) per-(batch, split) accumulators, resident
    #                 across the spatial ("arbitrary") grid axis.
    d = pl.program_id(1)          # spatial-split index (megacore)
    s = pl.program_id(2)          # spatial tile index within the split
    g = d * s_sub + s             # global spatial tile index

    x = x_ref[0].astype(jnp.float32)   # cast in-kernel (narrow dtypes stay narrow on DMA)
    t = t_ref[0].astype(jnp.float32)

    if needs_mask:
        # Validity depends only on axis 1 of the block:
        #  - lane-dense 3-D view (C, TM, 128): the row (sublane-group) index, in rows
        #  - generic 2-D view (C, TILE):       the lane (spatial) index, in elements
        # One iota + one compare; dead tiles (g past the end) mask to all-False.
        unit = x.shape[1]
        n_units = spatial_size // x.shape[-1] if x.ndim == 3 else spatial_size
        idx = jax.lax.broadcasted_iota(jnp.int32, x.shape, 1)
        valid = (g * unit + idx) < n_units
        t = jnp.where(valid, t, 0.0)

    if normalization == "sigmoid":
        # sigmoid(x) == 0.5 * (tanh(x/2) + 1): a single EUP op instead of exp + divide.
        p = 0.5 * (jnp.tanh(0.5 * x) + 1.0)
    elif normalization == "softmax":
        # torch Softmax(dim=1) == softmax over channels == axis 0 of the (C, ...) view.
        # Channel axis is fully resident in every block, so this is exact.
        m = jnp.max(x, axis=0, keepdims=True)
        e = jnp.exp(x - m)
        p = e * pl.reciprocal(jnp.sum(e, axis=0, keepdims=True), approx=False)
    else:  # 'none'
        p = x

    if needs_mask:
        p = jnp.where(valid, p, 0.0)   # padded / dead elements contribute nothing

    if x.ndim == 3:
        # Lane-parallel partial sums (C, 128): no XLU lane reduce in the hot loop.
        red = lambda a: jnp.sum(a, axis=1)
    else:
        red = lambda a: jnp.sum(a, axis=-1, keepdims=True)   # (C, 1) fallback

    @pl.when(s == 0)
    def _zero():
        inter_ref[...] = jnp.zeros_like(inter_ref)
        psum_ref[...] = jnp.zeros_like(psum_ref)
        tsum_ref[...] = jnp.zeros_like(tsum_ref)

    inter_ref[0, 0] += red(p * t)
    psum_ref[0, 0] += red(p)
    tsum_ref[0, 0] += red(t)


def dice_loss(x, target, *, normalization="sigmoid", weight=None,
              max_block_bytes=8 * 1024 * 1024):
    """Forward pass of _AbstractDiceLoss (canonical per-channel soft Dice).

    x, target: (N, C, *spatial) arrays (any number of spatial dims, any float dtype).
    weight:    optional per-channel weight, applied to the intersection (as in DiceLoss).
    Returns a scalar float32 loss.
    """
    assert normalization in ("sigmoid", "softmax", "none")
    assert x.shape == target.shape
    n, c = x.shape[0], x.shape[1]
    spatial = math.prod(x.shape[2:])

    isx = jnp.dtype(x.dtype).itemsize
    ist = jnp.dtype(target.dtype).itemsize
    per_elem = max(isx, ist)
    sub = max(_sublane_req(x.dtype), _sublane_req(target.dtype))

    # Free, contiguous reshape of the natural NCHW(D) layout — no transpose / HBM copy.
    x3 = x.reshape(n, c, spatial)
    t3 = target.reshape(n, c, spatial)

    if spatial >= _LANES and spatial % _LANES == 0:
        # Lane-dense path: view spatial as (rows, 128) so every channel's block fills
        # full [sub,128] vregs regardless of C.
        rows = spatial // _LANES
        xk = x3.reshape(n, c, rows, _LANES)
        tk = t3.reshape(n, c, rows, _LANES)
        max_tm = max(sub, max_block_bytes // (c * _LANES * per_elem))
        tm = rows if rows <= max_tm else max(sub, (max_tm // sub) * sub)
        block = (1, c, tm, _LANES)
        n_tiles = pl.cdiv(rows, tm)
        block_spatial = tm * _LANES
        acc_lanes = _LANES
        blk_in_bytes = sum(
            c * _roundup(tm, _sublane_req(d)) * _LANES * jnp.dtype(d).itemsize
            for d in (x.dtype, target.dtype))
        four_d = True
    else:
        # Generic fallback (spatial not a multiple of 128): channels on sublanes.
        # Tile budget accounts for sublane padding of c (roundup to 8/16/32).
        xk, tk = x3, t3
        c_pad = _roundup(c, sub)
        max_tile = max(_LANES, (max_block_bytes // (c_pad * per_elem)) // _LANES * _LANES)
        tile = spatial if spatial <= max_tile else max_tile
        block = (1, c, tile)
        n_tiles = pl.cdiv(spatial, tile)
        block_spatial = tile
        acc_lanes = 1
        blk_in_bytes = sum(
            _roundup(c, _sublane_req(d)) * _roundup(tile, _LANES) * jnp.dtype(d).itemsize
            for d in (x.dtype, target.dtype))
        four_d = False

    # Megacore split of the spatial reduction for odd / size-1 batch (v7x has 2 TCs;
    # a no-op on v5e/v6e).  Dead tiles are clamped in the index_map and fully masked.
    n_split = 2 if (n % 2 == 1 and n_tiles >= 2) else 1
    s_sub = pl.cdiv(n_tiles, n_split)
    needs_mask = (spatial % block_spatial != 0) or (s_sub * n_split != n_tiles)

    if s_sub * n_split == n_tiles:
        g_of = lambda d_, s_: d_ * s_sub + s_
    else:
        g_of = lambda d_, s_: jnp.minimum(d_ * s_sub + s_, n_tiles - 1)
    if four_d:
        in_map = lambda b, d_, s_: (b, 0, g_of(d_, s_), 0)
    else:
        in_map = lambda b, d_, s_: (b, 0, g_of(d_, s_))

    acc_spec = pl.BlockSpec((1, 1, c, acc_lanes), lambda b, d_, s_: (b, d_, 0, 0))
    acc_shape = jax.ShapeDtypeStruct((n, n_split, c, acc_lanes), jnp.float32)
    acc_block_bytes = 3 * _roundup(c, 8) * _roundup(acc_lanes, _LANES) * 4

    # 2 pipeline buffers per input block + double-buffered accumulator blocks + headroom.
    vmem_limit = 2 * blk_in_bytes + 2 * acc_block_bytes + 4 * 1024 * 1024
    vmem_limit = int(min(max(vmem_limit, 32 * 1024 * 1024), 100 * 1024 * 1024))

    kernel = functools.partial(
        _dice_partial_kernel, normalization=normalization,
        spatial_size=spatial, s_sub=s_sub, needs_mask=needs_mask)

    total = n * c * spatial
    cost = pl.CostEstimate(
        flops=6 * total,
        transcendentals=total if normalization in ("sigmoid", "softmax") else 0,
        bytes_accessed=total * (isx + ist) + 3 * n * n_split * c * acc_lanes * 4)

    inter, psum, tsum = pl.pallas_call(
        kernel,
        out_shape=(acc_shape, acc_shape, acc_shape),
        grid_spec=pltpu.PrefetchScalarGridSpec(
            num_scalar_prefetch=0,
            grid=(n, n_split, s_sub),
            in_specs=[pl.BlockSpec(block, in_map),
                      pl.BlockSpec(block, in_map)],
            out_specs=(acc_spec, acc_spec, acc_spec),
        ),
        compiler_params=pltpu.CompilerParams(
            # batch and spatial-split blocks are independent (megacore-shardable);
            # the inner spatial axis is the reduction.
            dimension_semantics=("parallel", "parallel", "arbitrary"),
            vmem_limit_bytes=vmem_limit,
        ),
        cost_estimate=cost,
    )(xk, tk)

    # Tiny epilogue: fold batch / split / lane partial sums and form the dice loss.
    intersect = jnp.sum(inter, axis=(0, 1, 3))     # (C,)
    sum_p = jnp.sum(psum, axis=(0, 1, 3))
    sum_t = jnp.sum(tsum, axis=(0, 1, 3))
    if weight is not None:
        intersect = jnp.asarray(weight, jnp.float32) * intersect
    per_channel_dice = 2.0 * intersect / jnp.maximum(sum_p + sum_t, _EPS)
    return 1.0 - jnp.mean(per_channel_dice)


def _reference(x, target, normalization="sigmoid", weight=None):
    c = x.shape[1]
    x2d = jnp.moveaxis(x, 1, 0).reshape(c, -1).astype(jnp.float32)
    t2d = jnp.moveaxis(target, 1, 0).reshape(c, -1).astype(jnp.float32)
    if normalization == "sigmoid":
        p = jax.nn.sigmoid(x2d)
    elif normalization == "softmax":
        p = jax.nn.softmax(x2d, axis=0)
    else:
        p = x2d
    inter = jnp.sum(p * t2d, axis=-1)
    if weight is not None:
        inter = jnp.asarray(weight, jnp.float32) * inter
    denom = jnp.sum(p, axis=-1) + jnp.sum(t2d, axis=-1)
    dice = 2.0 * inter / jnp.maximum(denom, _EPS)
    return 1.0 - jnp.mean(dice)


if __name__ == "__main__":
    key = jax.random.PRNGKey(0)
    k1, k2, k3, k4 = jax.random.split(key, 4)

    # Primary case: batch=2, channels=4, spatial 16x16 (HW=256 -> lane-dense 4-D path).
    x = jax.random.normal(k1, (2, 4, 16, 16), dtype=jnp.float32)
    t = (jax.random.uniform(k2, (2, 4, 16, 16)) > 0.5).astype(jnp.float32)
    for norm in ("sigmoid", "softmax", "none"):
        out = jax.block_until_ready(dice_loss(x, t, normalization=norm))
        ref = jax.block_until_ready(_reference(x, t, normalization=norm))
        assert jnp.allclose(out, ref, atol=1e-5, rtol=1e-5), (norm, out, ref)

    # (a) lane-dense path with N=1: exercises the megacore spatial split + masked tail
    #     (HW = 1920 = 15*128, tiny per-block budget -> multiple tiles, partial last tile).
    x2 = jax.random.normal(k3, (1, 3, 40, 48), dtype=jnp.float32)
    t2 = (jax.random.uniform(k4, (1, 3, 40, 48)) > 0.5).astype(jnp.float32)
    for norm in ("sigmoid", "softmax"):
        out = jax.block_until_ready(
            dice_loss(x2, t2, normalization=norm, max_block_bytes=2048))
        ref = jax.block_until_ready(_reference(x2, t2, normalization=norm))
        assert jnp.allclose(out, ref, atol=1e-5, rtol=1e-5), (norm, out, ref)

    # (b) generic 3-D path (HW=300, not a multiple of 128), partial last tile, even batch.
    x3 = jax.random.normal(k1, (2, 2, 10, 30), dtype=jnp.float32)
    t3 = (jax.random.uniform(k2, (2, 2, 10, 30)) > 0.5).astype(jnp.float32)
    out = jax.block_until_ready(
        dice_loss(x3, t3, normalization="sigmoid", max_block_bytes=2048))
    ref = jax.block_until_ready(_reference(x3, t3, normalization="sigmoid"))
    assert jnp.allclose(out, ref, atol=1e-5, rtol=1e-5), (out, ref)

    # (c) bf16 inputs, N=1, odd tile count: exercises bf16 (16,128) tile rounding,
    #     the split path with a dead (clamped + fully masked) tile, and per-channel weight.
    x4 = jax.random.normal(k3, (1, 2, 48, 128), dtype=jnp.bfloat16)
    t4 = (jax.random.uniform(k4, (1, 2, 48, 128)) > 0.5).astype(jnp.float32)
    w = jnp.array([0.25, 0.75], dtype=jnp.float32)
    out = jax.block_until_ready(
        dice_loss(x4, t4, normalization="sigmoid", weight=w, max_block_bytes=4096))
    ref = jax.block_until_ready(_reference(x4, t4, normalization="sigmoid", weight=w))
    assert jnp.allclose(out, ref, atol=1e-5, rtol=1e-5), (out, ref)

    print("KERNEL_OK")
</pallas_src>

<mosaic_0001>
module attributes {stable_mosaic.version = 11 : i64} {
  func.func @_dice_partial_kernel(%arg0: i32, %arg1: i32, %arg2: i32, %arg3: memref<1x4x2x128xf32, #tpu.memory_space<vmem>>, %arg4: memref<1x4x2x128xf32, #tpu.memory_space<vmem>>, %arg5: memref<1x1x4x128xf32, #tpu.memory_space<vmem>>, %arg6: memref<1x1x4x128xf32, #tpu.memory_space<vmem>>, %arg7: memref<1x1x4x128xf32, #tpu.memory_space<vmem>>) attributes {dimension_semantics = [#tpu.dimension_semantics<parallel>, #tpu.dimension_semantics<parallel>, #tpu.dimension_semantics<arbitrary>], iteration_bounds = array<i64: 2, 1, 1>, scalar_prefetch = 0 : i64, scratch_operands = 0 : i64, tpu.core_type = #tpu.core_type<tc>, window_params = [{transform_indices = @transform_0, window_bounds = array<i64: 1, 4, 2, 128>}, {transform_indices = @transform_1, window_bounds = array<i64: 1, 4, 2, 128>}, {transform_indices = @transform_2, window_bounds = array<i64: 1, 1, 4, 128>}, {transform_indices = @transform_3, window_bounds = array<i64: 1, 1, 4, 128>}, {transform_indices = @transform_4, window_bounds = array<i64: 1, 1, 4, 128>}]} {
    %c0 = arith.constant 0 : index
    %c0_0 = arith.constant 0 : index
    %c0_1 = arith.constant 0 : index
    %c0_2 = arith.constant 0 : index
    %0 = vector.load %arg3[%c0, %c0_0, %c0_1, %c0_2] : memref<1x4x2x128xf32, #tpu.memory_space<vmem>>, vector<1x4x2x128xf32>
    %1 = vector.shape_cast %0 : vector<1x4x2x128xf32> to vector<4x2x128xf32>
    %c0_3 = arith.constant 0 : index
    %c0_4 = arith.constant 0 : index
    %c0_5 = arith.constant 0 : index
    %c0_6 = arith.constant 0 : index
    %2 = vector.load %arg4[%c0_3, %c0_4, %c0_5, %c0_6] : memref<1x4x2x128xf32, #tpu.memory_space<vmem>>, vector<1x4x2x128xf32>
    %3 = vector.shape_cast %2 : vector<1x4x2x128xf32> to vector<4x2x128xf32>
    %cst = arith.constant 5.000000e-01 : f32
    %4 = vector.broadcast %cst : f32 to vector<4x2x128xf32>
    %5 = arith.mulf %4, %1 : vector<4x2x128xf32>
    %6 = math.tanh %5 : vector<4x2x128xf32>
    %cst_7 = arith.constant 1.000000e+00 : f32
    %7 = vector.broadcast %cst_7 : f32 to vector<4x2x128xf32>
    %8 = arith.addf %6, %7 : vector<4x2x128xf32>
    %cst_8 = arith.constant 5.000000e-01 : f32
    %9 = vector.broadcast %cst_8 : f32 to vector<4x2x128xf32>
    %10 = arith.mulf %9, %8 : vector<4x2x128xf32>
    %c0_i32 = arith.constant 0 : i32
    %11 = arith.cmpi eq, %arg2, %c0_i32 : i32
    %12 = arith.extui %11 : i1 to i32
    %c0_i32_9 = arith.constant 0 : i32
    %13 = arith.cmpi ne, %12, %c0_i32_9 : i32
    scf.if %13 {
      %cst_37 = arith.constant 0.000000e+00 : f32
      %36 = vector.broadcast %cst_37 : f32 to vector<1x1x4x128xf32>
      %c0_38 = arith.constant 0 : index
      %c0_39 = arith.constant 0 : index
      %c0_40 = arith.constant 0 : index
      %c0_41 = arith.constant 0 : index
      %37 = vector.load %arg5[%c0_38, %c0_39, %c0_40, %c0_41] : memref<1x1x4x128xf32, #tpu.memory_space<vmem>>, vector<1x1x4x128xf32>
      tpu.vector_store %arg5[%c0_38, %c0_39, %c0_40, %c0_41], %36 {strides = array<i32>} : memref<1x1x4x128xf32, #tpu.memory_space<vmem>>, vector<1x1x4x128xf32>,
      %cst_42 = arith.constant 0.000000e+00 : f32
      %38 = vector.broadcast %cst_42 : f32 to vector<1x1x4x128xf32>
      %c0_43 = arith.constant 0 : index
      %c0_44 = arith.constant 0 : index
      %c0_45 = arith.constant 0 : index
      %c0_46 = arith.constant 0 : index
      %39 = vector.load %arg6[%c0_43, %c0_44, %c0_45, %c0_46] : memref<1x1x4x128xf32, #tpu.memory_space<vmem>>, vector<1x1x4x128xf32>
      tpu.vector_store %arg6[%c0_43, %c0_44, %c0_45, %c0_46], %38 {strides = array<i32>} : memref<1x1x4x128xf32, #tpu.memory_space<vmem>>, vector<1x1x4x128xf32>,
      %cst_47 = arith.constant 0.000000e+00 : f32
      %40 = vector.broadcast %cst_47 : f32 to vector<1x1x4x128xf32>
      %c0_48 = arith.constant 0 : index
      %c0_49 = arith.constant 0 : index
      %c0_50 = arith.constant 0 : index
      %c0_51 = arith.constant 0 : index
      %41 = vector.load %arg7[%c0_48, %c0_49, %c0_50, %c0_51] : memref<1x1x4x128xf32, #tpu.memory_space<vmem>>, vector<1x1x4x128xf32>
      tpu.vector_store %arg7[%c0_48, %c0_49, %c0_50, %c0_51], %40 {strides = array<i32>} : memref<1x1x4x128xf32, #tpu.memory_space<vmem>>, vector<1x1x4x128xf32>,
    } else {
    }
    %c0_10 = arith.constant 0 : index
    %c0_11 = arith.constant 0 : index
    %c0_12 = arith.constant 0 : index
    %c0_13 = arith.constant 0 : index
    %14 = vector.load %arg5[%c0_10, %c0_11, %c0_12, %c0_13] : memref<1x1x4x128xf32, #tpu.memory_space<vmem>>, vector<1x1x4x128xf32>
    %15 = vector.shape_cast %14 : vector<1x1x4x128xf32> to vector<4x128xf32>
    %16 = arith.mulf %10, %3 : vector<4x2x128xf32>
    %cst_14 = arith.constant dense<0.000000e+00> : vector<4x128xf32>
    %17 = vector.multi_reduction <add>, %16, %cst_14 [1] : vector<4x2x128xf32> to vector<4x128xf32>
    %18 = arith.addf %15, %17 : vector<4x128xf32>
    %c0_15 = arith.constant 0 : index
    %c0_16 = arith.constant 0 : index
    %c0_17 = arith.constant 0 : index
    %c0_18 = arith.constant 0 : index
    %19 = vector.load %arg5[%c0_15, %c0_16, %c0_17, %c0_18] : memref<1x1x4x128xf32, #tpu.memory_space<vmem>>, vector<1x1x4x128xf32>
    %20 = vector.shape_cast %19 : vector<1x1x4x128xf32> to vector<4x128xf32>
    %21 = vector.shape_cast %18 : vector<4x128xf32> to vector<1x1x4x128xf32>
    tpu.vector_store %arg5[%c0_15, %c0_16, %c0_17, %c0_18], %21 {strides = array<i32>} : memref<1x1x4x128xf32, #tpu.memory_space<vmem>>, vector<1x1x4x128xf32>,
    %c0_19 = arith.constant 0 : index
    %c0_20 = arith.constant 0 : index
    %c0_21 = arith.constant 0 : index
    %c0_22 = arith.constant 0 : index
    %22 = vector.load %arg6[%c0_19, %c0_20, %c0_21, %c0_22] : memref<1x1x4x128xf32, #tpu.memory_space<vmem>>, vector<1x1x4x128xf32>
    %23 = vector.shape_cast %22 : vector<1x1x4x128xf32> to vector<4x128xf32>
    %cst_23 = arith.constant dense<0.000000e+00> : vector<4x128xf32>
    %24 = vector.multi_reduction <add>, %10, %cst_23 [1] : vector<4x2x128xf32> to vector<4x128xf32>
    %25 = arith.addf %23, %24 : vector<4x128xf32>
    %c0_24 = arith.constant 0 : index
    %c0_25 = arith.constant 0 : index
    %c0_26 = arith.constant 0 : index
    %c0_27 = arith.constant 0 : index
    %26 = vector.load %arg6[%c0_24, %c0_25, %c0_26, %c0_27] : memref<1x1x4x128xf32, #tpu.memory_space<vmem>>, vector<1x1x4x128xf32>
    %27 = vector.shape_cast %26 : vector<1x1x4x128xf32> to vector<4x128xf32>
    %28 = vector.shape_cast %25 : vector<4x128xf32> to vector<1x1x4x128xf32>
    tpu.vector_store %arg6[%c0_24, %c0_25, %c0_26, %c0_27], %28 {strides = array<i32>} : memref<1x1x4x128xf32, #tpu.memory_space<vmem>>, vector<1x1x4x128xf32>,
    %c0_28 = arith.constant 0 : index
    %c0_29 = arith.constant 0 : index
    %c0_30 = arith.constant 0 : index
    %c0_31 = arith.constant 0 : index
    %29 = vector.load %arg7[%c0_28, %c0_29, %c0_30, %c0_31] : memref<1x1x4x128xf32, #tpu.memory_space<vmem>>, vector<1x1x4x128xf32>
    %30 = vector.shape_cast %29 : vector<1x1x4x128xf32> to vector<4x128xf32>
    %cst_32 = arith.constant dense<0.000000e+00> : vector<4x128xf32>
    %31 = vector.multi_reduction <add>, %3, %cst_32 [1] : vector<4x2x128xf32> to vector<4x128xf32>
    %32 = arith.addf %30, %31 : vector<4x128xf32>
    %c0_33 = arith.constant 0 : index
    %c0_34 = arith.constant 0 : index
    %c0_35 = arith.constant 0 : index
    %c0_36 = arith.constant 0 : index
    %33 = vector.load %arg7[%c0_33, %c0_34, %c0_35, %c0_36] : memref<1x1x4x128xf32, #tpu.memory_space<vmem>>, vector<1x1x4x128xf32>
    %34 = vector.shape_cast %33 : vector<1x1x4x128xf32> to vector<4x128xf32>
    %35 = vector.shape_cast %32 : vector<4x128xf32> to vector<1x1x4x128xf32>
    tpu.vector_store %arg7[%c0_33, %c0_34, %c0_35, %c0_36], %35 {strides = array<i32>} : memref<1x1x4x128xf32, #tpu.memory_space<vmem>>, vector<1x1x4x128xf32>,
    return
  }
  func.func @transform_0(%arg0: i32, %arg1: i32, %arg2: i32) -> (i32, i32, i32, i32) {
    %c1_i32 = arith.constant 1 : i32
    %0 = arith.muli %arg1, %c1_i32 : i32
    %1 = arith.addi %0, %arg2 : i32
    %c0_i32 = arith.constant 0 : i32
    %c0_i32_0 = arith.constant 0 : i32
    %c0_i32_1 = arith.constant 0 : i32
    return %arg0, %c0_i32, %1, %c0_i32_0 : i32, i32, i32, i32
  }
  func.func @transform_1(%arg0: i32, %arg1: i32, %arg2: i32) -> (i32, i32, i32, i32) {
    %c1_i32 = arith.constant 1 : i32
    %0 = arith.muli %arg1, %c1_i32 : i32
    %1 = arith.addi %0, %arg2 : i32
    %c0_i32 = arith.constant 0 : i32
    %c0_i32_0 = arith.constant 0 : i32
    %c0_i32_1 = arith.constant 0 : i32
    return %arg0, %c0_i32, %1, %c0_i32_0 : i32, i32, i32, i32
  }
  func.func @transform_2(%arg0: i32, %arg1: i32, %arg2: i32) -> (i32, i32, i32, i32) {
    %c0_i32 = arith.constant 0 : i32
    %c0_i32_0 = arith.constant 0 : i32
    %c0_i32_1 = arith.constant 0 : i32
    return %arg0, %arg1, %c0_i32, %c0_i32_0 : i32, i32, i32, i32
  }
  func.func @transform_3(%arg0: i32, %arg1: i32, %arg2: i32) -> (i32, i32, i32, i32) {
    %c0_i32 = arith.constant 0 : i32
    %c0_i32_0 = arith.constant 0 : i32
    %c0_i32_1 = arith.constant 0 : i32
    return %arg0, %arg1, %c0_i32, %c0_i32_0 : i32, i32, i32, i32
  }
  func.func @transform_4(%arg0: i32, %arg1: i32, %arg2: i32) -> (i32, i32, i32, i32) {
    %c0_i32 = arith.constant 0 : i32
    %c0_i32_0 = arith.constant 0 : i32
    %c0_i32_1 = arith.constant 0 : i32
    return %arg0, %arg1, %c0_i32, %c0_i32_0 : i32, i32, i32, i32
  }
}

</mosaic_0001>

<bundles_post_ra>
// kernel: tpu_custom_call.1
= control target key start
LH: loop header
LB: loop body
LE: loop exit
PB: predicated region body
PF: predicated region fallthrough
CT: control target
= control target key end

     0   :  { %s1401_s0 = inlined_call_operand.hbm [shape: f32[2,4,2,128], index: 0, kind: input, shape index: {}]   ;;  %s1402_s1 = inlined_call_operand.hbm [shape: f32[2,4,2,128], index: 1, kind: input, shape index: {}]   ;;  %s1403_s2 = inlined_call_operand.hbm [shape: f32[2,1,4,128], index: 2, kind: output, shape index: {0}]   ;;  %s1404_s3 = inlined_call_operand.hbm [shape: f32[2,1,4,128], index: 3, kind: output, shape index: {1}]   ;;  %s1405_s4 = inlined_call_operand.hbm [shape: f32[2,1,4,128], index: 4, kind: output, shape index: {2}]  }
   0x1   :  { %1410 = sst [smem:[#allocation15_spill]] %s1401_s0 }
   0x2   :  { %10 = vsyncpa [#allocation3], 0 }
   0x3   :  { %12 = vsyncpa [#allocation3 + $0x1], 0 }
   0x4   :  { %13 = vsyncpa [#allocation6], 0 }
   0x5   :  { %15 = vsyncpa [#allocation6 + $0x1], 0 }
   0x6   :  { %16 = vsyncpa [#allocation4], 0 }
   0x7   :  { %18 = vsyncpa [#allocation4 + $0x1], 0 }
   0x8   :  { %19 = vsyncpa [#allocation9], 0 }
   0x9   :  { %21 = vsyncpa [#allocation9 + $0x1], 0  ;;  %s1051_s15 = smov 0   ;;  %s1053_s16 = smov 0  }
   0xa   :  { %s1055_s17 = smov 0   ;;  %s1057_s18 = smov 0  }
   0xb   :  { %s1059_s19 = smov 0   ;;  %s1061_s20 = smov 0  }
   0xc LB: > { %s1082_s21 = sadd.s32 4294967295, %s1016_s20   ;;  %s1406_s22 = sadd.s32 4294967294, %s1016_s20   ;;  %s1016_s20 = sphi %s1061_s20, %s27_s20   ;;  %s1012_s19 = sphi %s1059_s19, %s1429_s19   ;;  %s1008_s18 = sphi %s1057_s18, %s1428_s18   ;;  %s1004_s17 = sphi %s1055_s17, %s1427_s17   ;;  %s1000_s16 = sphi %s1053_s16, %s1426_s16   ;;  %s996_s15 = sphi %s1051_s15, %s1425_s15  }
   0xd   : > { %s46_s23 = sadd.s32 1, %s1012_s19  ;;  %s57_s24 = sadd.s32 1, %s1004_s17 }
   0xe   : > { %p48_p0 = scmp.ge.s32.totalorder %s46_s23, 2  ;;  %p64_p1 = scmp.ne.s32.totalorder %s1004_s17, %s1000_s16 }
   0xf   : > { %p65_p2 = scmp.eq.s32.totalorder %s1016_s20, 0  ;;  %p70_p3 = scmp.ne.s32.totalorder %s1000_s16, %s996_s15 }
  0x10   : > { %s1431_s23 = smov (%p48_p0, %s46_s23), 0  ;;  %p71_p5 = scmp.eq.s32.totalorder %s1082_s21, 0 }
  0x11   : > { %p1094_p4 = por %p65_p2, %p64_p1  ;;  %s52_s26 = ssub.s32 %s1012_s19, %s1431_s23 }
  0x12   : > { %p126_p6 = scmp.eq.s32.totalorder %s1082_s21, 1  ;;  %p55_p7 = scmp.eq.s32.totalorder %s52_s26, 0 }
  0x13   : > { %p1102_p8 = por %p71_p5, %p70_p3  ;;  %p132_p10 = scmp.eq.s32.totalorder %s1406_s22, 1 }
  0x14   : > { %p1106_p9 = por %p126_p6, %p64_p1  ;;  %p749_p13 = scmp.lt.s32.totalorder %s1016_s20, 2 }
  0x15   : > { %s1412_s27 = scalar_select %p1102_p8, 1, 0 }
  0x16   : > { %s1413_s28 = scalar_select %p1106_p9, 1, 0 }
  0x17   : > { %s1113_s29 = scalar_select %p55_p7, %s1004_s17, %s57_s24  }
  0x18   : > { %p1115_p11 = por %p132_p10, %p70_p3  ;;  %s1122_s5 = sand.u32 1, %s1004_s17  }
  0x19   : > { %s700_s6 = sshll.u32 %s1122_s5, 3  ;;  %s720_s7 = sshll.u32 %s1012_s19, 7 }
  0x1a   : > { %s1414_s30 = scalar_select %p1115_p11, 1, 0 }
  0x1b   : > { %s1415_s0 = sld [smem:[#allocation15_spill]]  ;;  %s212_s11 = scalar_lea.vmem [#allocation2], %s700_s6 }
  0x1c   : > { %s221_s12 = sshll.u32 %s212_s11, 4  ;;  %p1139_p0 = pnand %p749_p13, %p1094_p4  ;;  %s1135_s12 = int_to_ptr.vmem [resolvable:$true] %s221_s12 }
  0x1d   : > { %s209_s14 = scalar_lea.sflag [#allocation3], %s1122_s5 }
  0x1e   : > { %p812_p3 = pneg %p1139_p0 }
  0x21   : > { %s1131_s10 = scalar_lea.hbm %s1415_s0, %s720_s7  ;;  %s815_s25 = scalar_lea.hbm %s1415_s0, 256 }
  0x22   : > { %s810_s24 = scalar_lea.hbm %s1131_s10, 128  ;;  %p816_p4 = scmp.lt.u32.totalorder %s1131_s10, %s1415_s0 }
  0x23   : > { %p811_p2 = scmp.ne.s32.totalorder %s1131_s10, %s810_s24  ;;  %p817_p7 = scmp.lt.u32.totalorder %s815_s25, %s810_s24 }
  0x24   : > { %p819_p13 = scmp.lt.u32.totalorder %s810_s24, %s1131_s10 }
  0x25   : > { %p813_p5 = pnand %p812_p3, %p811_p2  ;;  %p818_p10 = por %p817_p7, %p816_p4 }
  0x27   : > { %p814_p6 = pneg %p813_p5  ;;  %p820_p12 = por %p819_p13, %p818_p10 }
  0x29   : > { %p821_p1 = pnand %p820_p12, %p814_p6 }
  0x2b   : > { %824 = shalt.err (!%p821_p1)
}
  0x2c   : > { %s825_s22 = scalar_lea.vmem %s1135_s12, 128  ;;  %s1018_s26 = smov [#allocation2]  }
  0x2d   : > { %p826_p2 = scmp.ne.s32.totalorder %s1135_s12, %s825_s22  ;;  %s830_s8 = sshll.u32 %s1018_s26, 4  ;;  %s831_s8 = int_to_ptr.vmem [resolvable:$false] %s830_s8 }
  0x2e   : > { %s832_s9 = scalar_lea.vmem %s831_s8, 256  ;;  %p833_p9 = scmp.lt.s32.totalorder %s1135_s12, %s831_s8 }
  0x2f   : > { %p828_p5 = pnand %p826_p2, %p812_p3  ;;  %p834_p4 = scmp.lt.s32.totalorder %s832_s9, %s825_s22 }
  0x31   : > { %p829_p11 = pneg %p828_p5  ;;  %p835_p7 = por %p834_p4, %p833_p9 }
  0x33   : > { %p836_p10 = pnand %p835_p7, %p829_p11 }
  0x35   : > { %839 = shalt.err (!%p836_p10)
}
  0x36   : > { %s1408_s24 = smov 32   ;;  %s1020_s25 = smov 2  }
  0x37   : > { %735 = dma.hbm_to_vmem [thread:$0]  (!%p1139_p0), %s1131_s10, 128, %s1135_s12, %s209_s14, %s1408_s24, %s1408_s24, %s1020_s25  }
  0x38   : > { %p252_p9 = scmp.lt.s32.totalorder %s1016_s20, 3  ;;  %s1181_s26 = scalar_lea.hbm %s1402_s1, %s720_s7 }
  0x39   : > { %p1417_p11 = scmp.ge.s32.totalorder %s1016_s20, 1  ;;  %s235_s9 = scalar_lea.vmem [#allocation5], %s700_s6 }
  0x3a   : > { %s244_s0 = sshll.u32 %s235_s9, 4  ;;  %s232_s10 = scalar_lea.sflag [#allocation6], %s1122_s5  ;;  %s1191_s0 = int_to_ptr.vmem [resolvable:$true] %s244_s0 }
  0x3b   : > { %p1185_p12 = pnand %p1417_p11, %p252_p9  ;;  %s840_s12 = scalar_lea.hbm %s1181_s26, 128 }
  0x3c   : > { %p841_p1 = scmp.ne.s32.totalorder %s1181_s26, %s840_s12  ;;  %s845_s22 = scalar_lea.hbm %s1402_s1, 256 }
  0x3d   : > { %p846_p2 = scmp.lt.u32.totalorder %s1181_s26, %s1402_s1  ;;  %p847_p5 = scmp.lt.u32.totalorder %s845_s22, %s840_s12 }
  0x3e   : > { %p843_p6 = pnand %p841_p1, %p812_p3  ;;  %p849_p7 = scmp.lt.u32.totalorder %s840_s12, %s1181_s26 }
  0x3f   : > { %p848_p4 = por %p847_p5, %p846_p2 }
  0x40   : > { %p844_p13 = pneg %p843_p6 }
  0x41   : > { %p850_p10 = por %p849_p7, %p848_p4 }
  0x43   : > { %p851_p9 = pnand %p850_p10, %p844_p13 }
  0x45   : > { %854 = shalt.err (!%p851_p9)
}
  0x46   : > { %s855_s6 = scalar_lea.vmem %s1191_s0, 128  ;;  %s1021_s9 = smov [#allocation5]  }
  0x47   : > { %p856_p11 = scmp.ne.s32.totalorder %s1191_s0, %s855_s6  ;;  %s860_s7 = sshll.u32 %s1021_s9, 4  ;;  %s861_s7 = int_to_ptr.vmem [resolvable:$false] %s860_s7 }
  0x48   : > { %s862_s24 = scalar_lea.vmem %s861_s7, 256  ;;  %p863_p8 = scmp.lt.s32.totalorder %s1191_s0, %s861_s7 }
  0x49   : > { %p858_p1 = pnand %p856_p11, %p812_p3  ;;  %p864_p2 = scmp.lt.s32.totalorder %s862_s24, %s855_s6 }
  0x4b   : > { %p859_p6 = pneg %p858_p1  ;;  %p865_p5 = por %p864_p2, %p863_p8 }
  0x4d   : > { %p866_p4 = pnand %p865_p5, %p859_p6 }
  0x4f   : > { %869 = shalt.err (!%p866_p4)
}
  0x50   : > { %s1419_s12 = smov 32   ;;  %256 = sbr.rel (%p1185_p12) target bundleno = 192 (0xc0), region = 28 }
  0x51   : > { %738 = dma.hbm_to_vmem [thread:$0]  (!%p1139_p0), %s1181_s26, 128, %s1191_s0, %s232_s10, %s1419_s12, %s1419_s12, %s1020_s25  }
  0x52   : > { %s1225_s14 = sand.u32 (!%p1185_p12), 1, %s1000_s16   ;;  %p1420_p8 = scmp.ne.s32.totalorder (!%p1185_p12), %s1412_s27, 0 }
  0x53   : > { %s707_s22 = sshll.u32 (!%p1185_p12), %s1225_s14, 3  ;;  %s259_s11 = scalar_lea.sflag (!%p1185_p12), [#allocation3], %s1225_s14 }
  0x54   : > { %s262_s13 = scalar_lea.vmem (!%p1185_p12), [#allocation2], %s707_s22 }
  0x57   : > { %979 = dma.done.wait (%p1420_p8), %s259_s11, 128  }
  0x58   : > { %981 = vsyncadd (%p1420_p8), %s259_s11, 4294967168  ;;  %s268_s0 = scalar_lea.sflag [#allocation6], %s1225_s14  ;;  %s271_s5 = scalar_lea.vmem [#allocation5], %s707_s22 }
  0x59   : > { %983 = dma.done.wait (%p1420_p8), %s268_s0, 128  }
  0x5a   : > { %985 = vsyncadd (%p1420_p8), %s268_s0, 4294967168  ;;  %s709_s25 = sshll.u32 %s1225_s14, 2  ;;  %v1022_v0 = vmov 0.0   ;;  %v313_v1 = vld [vmem:[%s262_s13] sm:$0x3]  ;;  %vm349_vm0 = vcmask 1041408  }
  0x5b   : > { %s1239_s26 = scalar_lea.vmem [#allocation8], %s709_s25  ;;  %s1242_s8 = scalar_lea.vmem [#allocation7], %s709_s25  ;;  %v314_v2 = vld [vmem:[%s262_s13 + $0x2] sm:$0x3]  ;;  %v315_v3 = vld [vmem:[%s262_s13 + $0x4] sm:$0x3] }
  0x5c   : > { %342 = vst [vmem:[%s1239_s26] sm:$0xf] %v1022_v0  ;;  %341 = vst [vmem:[%s1242_s8] sm:$0xf] %v1022_v0  ;;  %s1245_s10 = scalar_lea.vmem [#allocation10], %s709_s25  ;;  %v316_v4 = vld [vmem:[%s262_s13 + $0x6] sm:$0x3]  ;;  %v321_v5 = vmul.f32 0.5, %v313_v1 }
  0x5d   : > { %343 = vst [vmem:[%s1245_s10] sm:$0xf] %v1022_v0  ;;  %v322_v6 = vmul.f32 0.5, %v314_v2  ;;  %v323_v7 = vmul.f32 0.5, %v315_v3  ;;  %v324_v8 = vmul.f32 0.5, %v316_v4  ;;  %v317_v9 = vld [vmem:[%s271_s5] sm:$0x3] }
  0x5e   : > { %802 = vtanh.f32 %v321_v5  ;;  %v318_v10 = vld [vmem:[%s271_s5 + $0x2] sm:$0x3]  ;;  %v319_v11 = vld [vmem:[%s271_s5 + $0x4] sm:$0x3]  ;;  %v431_v12 = vsel %vm349_vm0, %v317_v9, 0.0  ;;  %vm382_vm1 = vcmask 1041409  }
  0x5f   : > { %804 = vtanh.f32 %v322_v6  ;;  %v438_v13 = vsel %vm349_vm0, %v318_v10, 0.0  ;;  %v320_v14 = vld [vmem:[%s271_s5 + $0x6] sm:$0x3]  ;;  %v432_v15 = vrot.slane %v431_v12, 4  ;;  %v445_v17 = vsel %vm349_vm0, %v319_v11, 0.0  ;;  %s474_s27 = sand.u32 1, %s1082_s21  }
  0x60   : > { %806 = vtanh.f32 %v323_v7  ;;  %v439_v16 = vrot.slane %v438_v13, 4  ;;  %v446_v18 = vrot.slane %v445_v17, 4  ;;  %v452_v19 = vsel %vm349_vm0, %v320_v14, 0.0  ;;  %s1268_s6 = sshll.u32 %s1008_s18, 6  ;;  %s508_s9 = sshll.u32 %s1239_s26, 4  ;;  %s1282_s9 = int_to_ptr.vmem [resolvable:$true] %s508_s9 }
  0x61   : > { %808 = vtanh.f32 %v324_v8  ;;  %v433_v20 = vadd.f32 %v432_v15, %v431_v12  ;;  %v453_v22 = vrot.slane %v452_v19, 4  ;;  %vm384_vm2 = vcmask 1042434   ;;  %s522_s7 = sshll.u32 %s1245_s10, 4  ;;  %s1280_s24 = scalar_lea.hbm %s1404_s3, %s1268_s6  ;;  %s1284_s7 = int_to_ptr.vmem [resolvable:$true] %s522_s7 }
  0x62   : > { %v440_v21 = vadd.f32 %v439_v16, %v438_v13  ;;  %v447_v23 = vadd.f32 %v446_v18, %v445_v17  ;;  %vm386_vm3 = vcmask 1043459   ;;  %s1291_s11 = scalar_lea.hbm %s1405_s4, %s1268_s6  ;;  %s494_s13 = sshll.u32 %s1242_s8, 4  ;;  %s1351_s13 = int_to_ptr.vmem [resolvable:$true] %s494_s13 }
  0x63   : > { %v434_v24 = vrot.slane %v433_v20, 2  ;;  %v454_v26 = vadd.f32 %v453_v22, %v452_v19  ;;  %s1296_s0 = scalar_lea.sflag [#allocation9], %s474_s27  ;;  %s870_s5 = scalar_lea.vmem %s1282_s9, 64 }
  0x64   : > { %v441_v25 = vrot.slane %v440_v21, 2  ;;  %v448_v27 = vrot.slane %v447_v23, 2  ;;  %p871_p0 = scmp.ne.s32.totalorder %s1282_s9, %s870_s5  ;;  %p1421_p3 = scmp.ne.s32.totalorder %s1413_s28, 0 }
  0x65   : > { %v435_v28 = vadd.f32 %v434_v24, %v433_v20  ;;  %v455_v30 = vrot.slane %v454_v26, 2  ;;  %s1023_s25 = smov [#allocation8]  }
  0x66   : > { %v442_v29 = vadd.f32 %v441_v25, %v440_v21  ;;  %v449_v31 = vadd.f32 %v448_v27, %v447_v23  ;;  %p872_p12 = pnand %p871_p0, %p1421_p3 }
  0x67   : > { %v436_v33 = vrot.slane %v435_v28, 1  ;;  %v456_v35 = vadd.f32 %v455_v30, %v454_v26 }
  0x68   : > { %v803_v32 = vpop.eup %802  ;;  %v443_v34 = vrot.slane %v442_v29, 1  ;;  %v450_v38 = vrot.slane %v449_v31, 1  ;;  %p873_p13 = pneg %p872_p12 }
  0x69   : > { %v805_v36 = vpop.eup %804  ;;  %v329_v37 = vadd.f32 1.0, %v803_v32  ;;  %v437_v41 = vadd.f32 %v436_v33, %v435_v28  ;;  %v457_v43 = vrot.slane %v456_v35, 1 }
  0x6a   : > { %v807_v39 = vpop.eup %806  ;;  %v330_v40 = vadd.f32 1.0, %v805_v36  ;;  %v444_v42 = vadd.f32 %v443_v34, %v442_v29  ;;  %v451_v47 = vadd.f32 %v450_v38, %v449_v31 }
  0x6b   : > { %v809_v44 = vpop.eup %808  ;;  %v331_v45 = vadd.f32 1.0, %v807_v39  ;;  %v333_v46 = vmul.f32 0.5, %v329_v37  ;;  %v458_v50 = vadd.f32 %v457_v43, %v456_v35 }
  0x6c   : > { %v332_v48 = vadd.f32 1.0, %v809_v44  ;;  %v334_v49 = vmul.f32 0.5, %v330_v40  ;;  %v463_v51 = vsel %vm382_vm1, %v444_v42, %v437_v41  ;;  %v430_v40 = vld [vmem:[%s1245_s10] sm:$0xf] }
  0x6d   : > { %v335_v52 = vmul.f32 0.5, %v331_v45  ;;  %v392_v53 = vsel %vm349_vm0, %v333_v46, 0.0  ;;  %v345_v54 = vmul.f32 %v333_v46, %v317_v9  ;;  %v464_v55 = vsel %vm384_vm2, %v451_v47, %v463_v51  ;;  %v391_v45 = vld [vmem:[%s1239_s26] sm:$0xf] }
  0x6e   : > { %v336_v56 = vmul.f32 0.5, %v332_v48  ;;  %v393_v57 = vrot.slane %v392_v53, 4  ;;  %v399_v58 = vsel %vm349_vm0, %v334_v49, 0.0  ;;  %v346_v59 = vmul.f32 %v334_v49, %v318_v10 }
  0x6f   : > { %v400_v60 = vrot.slane %v399_v58, 4  ;;  %v406_v61 = vsel %vm349_vm0, %v335_v52, 0.0  ;;  %v347_v62 = vmul.f32 %v335_v52, %v319_v11  ;;  %v350_v63 = vsel %vm349_vm0, %v345_v54, 0.0 }
  0x70   : > { %v394_v0 = vadd.f32 %v393_v57, %v392_v53  ;;  %v407_v1 = vrot.slane %v406_v61, 4  ;;  %v413_v2 = vsel %vm349_vm0, %v336_v56, 0.0  ;;  %v348_v3 = vmul.f32 %v336_v56, %v320_v14 }
  0x71   : > { %v401_v4 = vadd.f32 %v400_v60, %v399_v58  ;;  %v414_v5 = vrot.slane %v413_v2, 4  ;;  %v351_v6 = vrot.slane %v350_v63, 4  ;;  %v357_v7 = vsel %vm349_vm0, %v346_v59, 0.0  ;;  %v344_v60 = vld [vmem:[%s1242_s8] sm:$0xf] }
  0x72   : > { %v395_v8 = vrot.slane %v394_v0, 2  ;;  %v408_v9 = vadd.f32 %v407_v1, %v406_v61  ;;  %v358_v10 = vrot.slane %v357_v7, 4  ;;  %v364_v12 = vsel %vm349_vm0, %v347_v62, 0.0 }
  0x73   : > { %v402_v13 = vrot.slane %v401_v4, 2  ;;  %v415_v15 = vadd.f32 %v414_v5, %v413_v2  ;;  %v352_v11 = vadd.f32 %v351_v6, %v350_v63  ;;  %v365_v16 = vrot.slane %v364_v12, 4 }
  0x74   : > { %v396_v17 = vadd.f32 %v395_v8, %v394_v0  ;;  %v409_v18 = vrot.slane %v408_v9, 2  ;;  %v359_v19 = vadd.f32 %v358_v10, %v357_v7  ;;  %v371_v20 = vsel %vm349_vm0, %v348_v3, 0.0 }
  0x75   : > { %v403_v14 = vadd.f32 %v402_v13, %v401_v4  ;;  %v416_v21 = vrot.slane %v415_v15, 2  ;;  %v353_v22 = vrot.slane %v352_v11, 2  ;;  %v366_v23 = vadd.f32 %v365_v16, %v364_v12 }
  0x76   : > { %v397_v24 = vrot.slane %v396_v17, 1  ;;  %v410_v25 = vadd.f32 %v409_v18, %v408_v9  ;;  %v360_v26 = vrot.slane %v359_v19, 2  ;;  %v372_v27 = vrot.slane %v371_v20, 4 }
  0x77   : > { %v404_v28 = vrot.slane %v403_v14, 1  ;;  %v417_v29 = vadd.f32 %v416_v21, %v415_v15  ;;  %v354_v30 = vadd.f32 %v353_v22, %v352_v11  ;;  %v367_v31 = vrot.slane %v366_v23, 2 }
  0x78   : > { %v398_v32 = vadd.f32 %v397_v24, %v396_v17  ;;  %v411_v33 = vrot.slane %v410_v25, 1  ;;  %v361_v34 = vadd.f32 %v360_v26, %v359_v19  ;;  %v373_v35 = vadd.f32 %v372_v27, %v371_v20 }
  0x79   : > { %v405_v36 = vadd.f32 %v404_v28, %v403_v14  ;;  %v418_v37 = vrot.slane %v417_v29, 1  ;;  %v355_v38 = vrot.slane %v354_v30, 1  ;;  %v368_v39 = vadd.f32 %v367_v31, %v366_v23 }
  0x7a   : > { %v412_v41 = vadd.f32 %v411_v33, %v410_v25  ;;  %v362_v42 = vrot.slane %v361_v34, 1  ;;  %v374_v43 = vrot.slane %v373_v35, 2  ;;  %v465_v44 = vsel %vm386_vm3, %v458_v50, %v464_v55 }
  0x7b   : > { %v419_v46 = vadd.f32 %v418_v37, %v417_v29  ;;  %v424_v47 = vsel %vm382_vm1, %v405_v36, %v398_v32  ;;  %v356_v48 = vadd.f32 %v355_v38, %v354_v30  ;;  %v369_v49 = vrot.slane %v368_v39, 1 }
  0x7c   : > { %v425_v51 = vsel %vm384_vm2, %v412_v41, %v424_v47  ;;  %v363_v52 = vadd.f32 %v362_v42, %v361_v34  ;;  %v375_v50 = vadd.f32 %v374_v43, %v373_v35  ;;  %v467_v53 = vadd.f32 %v465_v44, %v430_v40 }
  0x7d   : > { %v426_v54 = vsel %vm386_vm3, %v419_v46, %v425_v51  ;;  %v370_v55 = vadd.f32 %v369_v49, %v368_v39 }
  0x7e   : > { %v428_v56 = vadd.f32 %v426_v54, %v391_v45  ;;  %v376_v57 = vrot.slane %v375_v50, 1  ;;  %v383_v58 = vsel %vm382_vm1, %v363_v52, %v356_v48  ;;  %468 = vst [vmem:[%s1245_s10] sm:$0xf] %v467_v53  ;;  %s874_s10 = sshll.u32 %s1023_s25, 4  ;;  %s875_s10 = int_to_ptr.vmem [resolvable:$false] %s874_s10 }
  0x7f   : > { %v385_v59 = vsel %vm384_vm2, %v370_v55, %v383_v58  ;;  %s876_s18 = scalar_lea.vmem %s875_s10, 128  ;;  %p877_p7 = scmp.lt.s32.totalorder %s1282_s9, %s875_s10 }
  0x80   : > { %429 = vst [vmem:[%s1239_s26] sm:$0xf] %v428_v56  ;;  %v377_v61 = vadd.f32 %v376_v57, %v375_v50  ;;  %p878_p10 = scmp.lt.s32.totalorder %s876_s18, %s870_s5 }
  0x82   : > { %p879_p9 = por %p878_p10, %p877_p7 }
  0x84   : > { %p880_p11 = pnand %p879_p9, %p873_p13 }
  0x86   : > { %883 = shalt.err (!%p880_p11)
}
  0x87   : > { %s884_s26 = scalar_lea.hbm %s1280_s24, 64  ;;  %s888_s12 = scalar_lea.hbm %s1404_s3, 128 }
  0x88   : > { %p885_p1 = scmp.ne.s32.totalorder %s1280_s24, %s884_s26  ;;  %p889_p5 = scmp.lt.u32.totalorder %s1280_s24, %s1404_s3 }
  0x89   : > { %p890_p4 = scmp.lt.u32.totalorder %s888_s12, %s884_s26  ;;  %p892_p0 = scmp.lt.u32.totalorder %s884_s26, %s1280_s24 }
  0x8a   : > { %p886_p6 = pnand %p885_p1, %p1421_p3 }
  0x8b   : > { %p891_p8 = por %p890_p4, %p889_p5 }
  0x8c   : > { %p887_p2 = pneg %p886_p6 }
  0x8d   : > { %p893_p12 = por %p892_p0, %p891_p8 }
  0x8f   : > { %p894_p13 = pnand %p893_p12, %p887_p2 }
  0x91   : > { %897 = shalt.err (!%p894_p13)
}
  0x92   : > { %727 = dma.vmem_to_hbm [thread:$0]  (%p1421_p3), %s1282_s9, 64, %s1280_s24, %s1296_s0   ;;  %v387_v62 = vsel %vm386_vm3, %v377_v61, %v385_v59 }
  0x93   : > { %s898_s5 = scalar_lea.vmem %s1284_s7, 64  ;;  %s1024_s10 = smov [#allocation10]  }
  0x94   : > { %p899_p7 = scmp.ne.s32.totalorder %s1284_s7, %s898_s5  ;;  %s902_s18 = sshll.u32 %s1024_s10, 4  ;;  %s903_s18 = int_to_ptr.vmem [resolvable:$false] %s902_s18 }
  0x95   : > { %s904_s26 = scalar_lea.vmem %s903_s18, 128  ;;  %p905_p11 = scmp.lt.s32.totalorder %s1284_s7, %s903_s18 }
  0x96   : > { %p900_p10 = pnand %p899_p7, %p1421_p3  ;;  %p906_p1 = scmp.lt.s32.totalorder %s904_s26, %s898_s5 }
  0x98   : > { %p901_p9 = pneg %p900_p10  ;;  %p907_p6 = por %p906_p1, %p905_p11 }
  0x9a   : > { %p908_p2 = pnand %p907_p6, %p901_p9 }
  0x9c   : > { %911 = shalt.err (!%p908_p2)
}
  0x9d   : > { %s912_s9 = scalar_lea.hbm %s1291_s11, 64  ;;  %s916_s21 = scalar_lea.hbm %s1405_s4, 128 }
  0x9e   : > { %p913_p5 = scmp.ne.s32.totalorder %s1291_s11, %s912_s9  ;;  %p917_p0 = scmp.lt.u32.totalorder %s1291_s11, %s1405_s4 }
  0x9f   : > { %p918_p12 = scmp.lt.u32.totalorder %s916_s21, %s912_s9  ;;  %p920_p7 = scmp.lt.u32.totalorder %s912_s9, %s1291_s11 }
  0xa0   : > { %p914_p4 = pnand %p913_p5, %p1421_p3 }
  0xa1   : > { %p919_p13 = por %p918_p12, %p917_p0 }
  0xa2   : > { %p915_p8 = pneg %p914_p4 }
  0xa3   : > { %p921_p10 = por %p920_p7, %p919_p13 }
  0xa5   : > { %p922_p9 = pnand %p921_p10, %p915_p8 }
  0xa7   : > { %925 = shalt.err (!%p922_p9)
}
  0xa8   : > { %728 = dma.vmem_to_hbm [thread:$0]  (%p1421_p3), %s1284_s7, 64, %s1291_s11, %s1296_s0   ;;  %v389_v63 = vadd.f32 %v387_v62, %v344_v60 }
  0xa9   : > { %s1347_s10 = scalar_lea.hbm %s1403_s2, %s1268_s6  ;;  %s470_s18 = scalar_lea.sflag [#allocation4], %s1225_s14 }
  0xaa   : > { %390 = vst [vmem:[%s1242_s8] sm:$0xf] %v389_v63  ;;  %s926_s26 = scalar_lea.vmem %s1351_s13, 64  ;;  %s1025_s7 = smov [#allocation7]  }
  0xab   : > { %p927_p11 = scmp.ne.s32.totalorder %s1351_s13, %s926_s26  ;;  %s930_s11 = sshll.u32 %s1025_s7, 4  ;;  %s931_s11 = int_to_ptr.vmem [resolvable:$false] %s930_s11 }
  0xac   : > { %s932_s0 = scalar_lea.vmem %s931_s11, 128  ;;  %p933_p2 = scmp.lt.s32.totalorder %s1351_s13, %s931_s11 }
  0xad   : > { %p928_p1 = pnand %p927_p11, %p1421_p3  ;;  %p934_p5 = scmp.lt.s32.totalorder %s932_s0, %s926_s26 }
  0xaf   : > { %p929_p6 = pneg %p928_p1  ;;  %p935_p4 = por %p934_p5, %p933_p2 }
  0xb1   : > { %p936_p8 = pnand %p935_p4, %p929_p6 }
  0xb3   : > { %939 = shalt.err (!%p936_p8)
}
  0xb4   : > { %s940_s14 = scalar_lea.hbm %s1347_s10, 64  ;;  %s944_s9 = scalar_lea.hbm %s1403_s2, 128 }
  0xb5   : > { %p941_p0 = scmp.ne.s32.totalorder %s1347_s10, %s940_s14  ;;  %p945_p7 = scmp.lt.u32.totalorder %s1347_s10, %s1403_s2 }
  0xb6   : > { %p946_p10 = scmp.lt.u32.totalorder %s944_s9, %s940_s14  ;;  %p948_p11 = scmp.lt.u32.totalorder %s940_s14, %s1347_s10 }
  0xb7   : > { %p942_p12 = pnand %p941_p0, %p1421_p3 }
  0xb8   : > { %p947_p9 = por %p946_p10, %p945_p7 }
  0xb9   : > { %p943_p13 = pneg %p942_p12 }
  0xba   : > { %p949_p1 = por %p948_p11, %p947_p9 }
  0xbc   : > { %p950_p6 = pnand %p949_p1, %p943_p13 }
  0xbe   : > { %953 = shalt.err (!%p950_p6)
}
  0xbf   : > { %726 = dma.vmem_to_hbm [thread:$0]  (%p1421_p3), %s1351_s13, 64, %s1347_s10, %s470_s18  }
  0xc0 PF: > { %s534_s21 = sand.u32 1, %s996_s15   ;;  %p1422_p2 = scmp.ne.s32.totalorder %s1414_s30, 0 }
  0xc1   : > { %p1423_p5 = scmp.ge.s32.totalorder %s1016_s20, 2  ;;  %s535_s12 = scalar_lea.sflag [#allocation4], %s534_s21 }
  0xc3   : > { %p740_p4 = pnand %p1423_p5, %p1422_p2 }
  0xc5   : > { %987 = dma.done.wait (!%p740_p4), %s535_s12, 64  }
  0xc6   : > { %989 = vsyncadd (!%p740_p4), %s535_s12, 4294967232  ;;  %s1424_s22 = sadd.s32 4294967294, %s1016_s20  }
  0xc7   : > { %s543_s25 = sand.u32 1, %s1424_s22  }
  0xc8   : > { %s544_s5 = scalar_lea.sflag [#allocation9], %s543_s25 }
  0xc9   : > { %991 = dma.done.wait (!%p740_p4), %s544_s5, 128  }
  0xca   : > { %993 = vsyncadd (!%p740_p4), %s544_s5, 4294967168  ;;  %s27_s20 = sadd.s32 1, %s1016_s20   ;;  %s1425_s15 = smov %s1000_s16 }
  0xcb   : > { %p24_p3 = scmp.ge.s32.totalorder %s27_s20, 4   ;;  %s1426_s16 = smov %s1004_s17 }
  0xcc   : > { %s1427_s17 = smov %s1113_s29  ;;  %s1428_s18 = smov %s1012_s19 }
  0xcd   : > { %s1429_s19 = smov %s1431_s23  ;;  %26 = sbr.rel (!%p24_p3) target bundleno = 12 (0xc), region = 122 }
  0xd4   :  { %558 = vsyncpa [#allocation3], 1 }
  0xd5   :  { %560 = vsyncpa [#allocation3 + $0x1], 1 }
  0xd6   :  { %561 = vsyncpa [#allocation6], 1 }
  0xd7   :  { %563 = vsyncpa [#allocation6 + $0x1], 1 }
  0xd8   :  { %564 = vsyncpa [#allocation4], 1 }
  0xd9   :  { %566 = vsyncpa [#allocation4 + $0x1], 1 }
  0xda   :  { %567 = vsyncpa [#allocation9], 1 }
  0xdb   :  { %569 = vsyncpa [#allocation9 + $0x1], 1 }

</bundles_post_ra>
